<compile_context>
chip_gen: v5e
topology: v5e:2x2
jax: 0.10.0
libtpu: 0.0.40
codegen_flags: <defaults>
</compile_context>

<pallas_src>
import functools

import jax
import jax.numpy as jnp
import numpy as np
from jax.experimental import pallas as pl
from jax.experimental.pallas import tpu as pltpu

_LANES = 128
_N_STATS = 8                          # rows of the per-split partial-sum slab
_MAX_TILE_ROWS = 8192                 # hard cap on rows per input block
_INPUT_VMEM_BUDGET = 16 * 1024 * 1024 # double-buffered x+t block budget (bytes)
_VMEM_LIMIT_BYTES = 32 * 1024 * 1024  # raises v5e's 16 MiB scoped default; safe on v6e/v7x
_NUM_CORE_SPLITS = 2                  # leading "parallel" axis (v7x has 2 TensorCores)
_MIN_ROWS_FOR_SPLIT = 1024            # don't split tiny inputs
_GAMMA = 1.333                        # focal-loss exponent from the reference module

# stat-row indices inside the (8, 128) slab
_BCE, _FOCAL, _P, _T, _PT, _HARD, _HT, _CNT = range(_N_STATS)

_VALID_MODES = ("focal", "bce_no_dice", "dice", "dice+bce")


def _metrics_kernel(x_ref, t_ref, o_ref, *, mode, sparse, gamma):
    """One (tile_rows, 128) tile -> accumulate per-lane sums into an (8, 128) slab.

    Padded elements were filled with (x = finfo.min, t = 0) by the wrapper, which
    makes every statistic exactly 0 there, so the dense path needs no per-element
    masking at all.  The sparse path masks only on the raw label (0 = unlabeled).
    """
    @pl.when(pl.program_id(1) == 0)
    def _():
        o_ref[...] = jnp.zeros_like(o_ref)

    x = x_ref[...].astype(jnp.float32)
    traw = t_ref[...].astype(jnp.float32)
    lanes = x.shape[1]

    if sparse:
        valid = traw != 0.0                        # 0 = unlabeled -> dropped
        t = (traw == 1.0).astype(jnp.float32)      # 1 -> fg(1), 2 -> bg(0)
    else:
        valid = None
        t = traw

    def rsum(v, mask=False):
        # `mask` is only needed for terms that are nonzero at unlabeled
        # positions; t-weighted terms are already 0 there (t == 0).
        if mask and valid is not None:
            v = jnp.where(valid, v, 0.0)
        return jnp.sum(v, axis=0, keepdims=True)

    zero_row = jnp.zeros((1, lanes), jnp.float32)
    rows_out = [zero_row] * _N_STATS

    need_bce = mode in ("bce_no_dice", "dice+bce", "focal")
    need_soft = mode in ("dice", "dice+bce")
    need_hard = mode in ("dice", "dice+bce", "focal")

    # Shared transcendental: e = exp(-|x|) feeds both the stable BCE softplus
    # term and the sigmoid used by the soft-dice terms (single EUP exp).
    e = jnp.exp(-jnp.abs(x)) if (need_bce or need_soft) else None

    if need_bce:
        # Numerically-stable binary_cross_entropy_with_logits.
        bce = jnp.maximum(x, 0.0) - x * t + jnp.log(1.0 + e)
        if mode == "focal":
            # pt = exp(-bce) exactly matches the reference formula (and keeps
            # the same EUP count as deriving pt from sigmoid in this mode).
            pt = jnp.exp(-bce)
            rows_out[_FOCAL] = rsum((1.0 - pt) ** gamma * bce, mask=True)
        else:
            rows_out[_BCE] = rsum(bce, mask=True)

    if need_soft:
        recip = 1.0 / (1.0 + e)
        p = jnp.where(x >= 0.0, recip, e * recip)  # == sigmoid(x), reuses e
        rows_out[_P] = rsum(p, mask=True)
        rows_out[_PT] = rsum(p * t)                # t == 0 where invalid

    if need_hard:
        hard = (x >= 0.0).astype(jnp.float32)      # sigmoid(x) >= 0.5  <=>  x >= 0
        rows_out[_HARD] = rsum(hard, mask=True)
        rows_out[_HT] = rsum(hard * t)
        rows_out[_T] = rsum(t)

    if sparse:
        rows_out[_CNT] = rsum(valid.astype(jnp.float32))

    # Single full-slab accumulate (one (8,128) block RMW per grid step).
    o_ref[...] += jnp.concatenate(rows_out, axis=0)


def _round_up(v, m):
    return ((v + m - 1) // m) * m


def _partial_sums(x_flat, t_flat, *, mode, sparse, gamma=_GAMMA):
    """Pad + reshape to a lane-dense (rows, 128) slab and reduce. Returns (8,) f32 sums."""
    n = x_flat.shape[0]
    rows = max(1, pl.cdiv(n, _LANES))

    # Two-way "parallel" split so v7x's two TensorCores both work (harmless on
    # single-TC v5e/v6e); only engaged once there is enough data to split.
    num_splits = _NUM_CORE_SPLITS if rows >= _MIN_ROWS_FOR_SPLIT else 1

    # Large row tiles so per-grid-step pipeline overhead is amortized; capped so
    # the double-buffered x+t input blocks stay within _INPUT_VMEM_BUDGET on
    # every generation (v5e scoped default raised via vmem_limit_bytes below).
    bytes_per_row = _LANES * (jnp.dtype(x_flat.dtype).itemsize
                              + jnp.dtype(t_flat.dtype).itemsize)
    cap = _INPUT_VMEM_BUDGET // (2 * bytes_per_row)
    cap = min(_MAX_TILE_ROWS, max(32, (cap // 32) * 32))
    rows_per_split = pl.cdiv(rows, num_splits)
    tile_rows = min(cap, _round_up(rows_per_split, 32))   # 32: int8/bf16/f32 tiling

    bpc = pl.cdiv(rows, num_splits * tile_rows)            # row-blocks per split
    rows_padded = num_splits * bpc * tile_rows
    n_padded = rows_padded * _LANES

    # Sentinel padding (finite very-negative logit, target 0): bce=0, p=0,
    # hard=0, t=0 at every padded element, so no in-kernel tail masking and no
    # block-index clamping is needed.  (Finite, NOT -inf: -inf * 0 would be NaN.)
    pad = n_padded - n
    if pad:
        x_sentinel = jnp.finfo(x_flat.dtype).min
        x_flat = jnp.pad(x_flat, (0, pad), constant_values=x_sentinel)
        t_flat = jnp.pad(t_flat, (0, pad), constant_values=0)
    x2 = x_flat.reshape(rows_padded, _LANES)
    t2 = t_flat.reshape(rows_padded, _LANES)

    def in_map(c, i):
        return (c * bpc + i, 0)

    out = pl.pallas_call(
        functools.partial(_metrics_kernel, mode=mode, sparse=sparse, gamma=gamma),
        out_shape=jax.ShapeDtypeStruct((num_splits * _N_STATS, _LANES), jnp.float32),
        grid_spec=pltpu.PrefetchScalarGridSpec(
            num_scalar_prefetch=0,
            grid=(num_splits, bpc),
            in_specs=[pl.BlockSpec((tile_rows, _LANES), in_map),
                      pl.BlockSpec((tile_rows, _LANES), in_map)],
            out_specs=pl.BlockSpec((_N_STATS, _LANES), lambda c, i: (c, 0)),
        ),
        compiler_params=pltpu.CompilerParams(
            dimension_semantics=("parallel", "arbitrary"),
            vmem_limit_bytes=_VMEM_LIMIT_BYTES),
    )(x2, t2)

    # Lane-reduce + combine the per-split slabs in the surrounding JAX graph.
    return jnp.sum(out.reshape(num_splits, _N_STATS, _LANES), axis=(0, 2))


class BinaryMetrics:
    """JAX/Pallas port of the PyTorch BinaryMetrics module (forward pass only)."""

    def __init__(self, loss_mode: str, smooth=1024):
        if loss_mode not in _VALID_MODES:
            raise ValueError(
                "Invalid loss. Use 'boundary' or 'focal' or 'dice' or 'dice+bce'.")
        self.loss_mode = loss_mode
        self.smooth = float(smooth)

    def __call__(self, predict, target, sparse_label=False):
        x = jnp.asarray(predict).reshape(-1)
        if not jnp.issubdtype(x.dtype, jnp.floating):
            x = x.astype(jnp.float32)
        t = jnp.asarray(target).reshape(-1)
        if t.dtype == jnp.bool_:
            t = t.astype(jnp.int8)          # keep the target stream narrow

        n = x.shape[0]
        s = _partial_sums(x, t, mode=self.loss_mode, sparse=sparse_label)
        bce_sum, focal_sum, p_sum, t_sum, pt_sum, hard_sum, hard_t_sum, cnt = (
            s[i] for i in range(_N_STATS))
        # dense count is static; sparse count comes from the kernel
        n_valid = cnt if sparse_label else jnp.float32(n)

        intersection = 2.0 * hard_t_sum
        union = hard_sum + t_sum
        tp = hard_t_sum
        fn = t_sum - tp
        tn = n_valid - hard_sum - t_sum + tp
        fp = hard_sum - tp
        nan = jnp.float32(jnp.nan)

        # NOTE: like torch, a fully-unlabeled sparse input gives a NaN mean (0/0).
        if self.loss_mode == "focal":
            return (focal_sum / n_valid, intersection, union, tp, fn, tn, fp)
        if self.loss_mode == "bce_no_dice":
            return (0.2 * bce_sum / n_valid, nan, nan, nan, nan, nan, nan)
        dice_loss = 1.0 - (2.0 * pt_sum + self.smooth) / (p_sum + t_sum + self.smooth)
        if self.loss_mode == "dice":
            return (dice_loss, intersection, union, tp, fn, tn, fp)
        # dice+bce
        total = 0.1 * dice_loss + 1.9 * (bce_sum / n_valid)
        return (total, intersection, union, tp, fn, tn, fp)


def _reference_metrics(predict, target, mode, sparse=False, smooth=1024.0,
                       gamma=_GAMMA):
    """Plain-NumPy (float64) mirror of the PyTorch module for sanity checks."""
    x = np.asarray(predict, dtype=np.float64).reshape(-1)
    t = np.asarray(target, dtype=np.float64).reshape(-1)
    if sparse:
        keep = t != 0
        x = x[keep]
        t = 2.0 - t[keep]
    bce = np.maximum(x, 0.0) - x * t + np.log1p(np.exp(-np.abs(x)))
    p = 1.0 / (1.0 + np.exp(-x))
    hard = (p >= 0.5).astype(np.float64)
    dice = 1.0 - (2.0 * np.sum(p * t) + smooth) / (np.sum(p) + np.sum(t) + smooth)
    inter = 2.0 * np.sum(t * hard)
    union = np.sum(hard) + np.sum(t)
    tp = np.sum(hard * t)
    fn = np.sum((1.0 - hard) * t)
    tn = np.sum((1.0 - hard) * (1.0 - t))
    fp = np.sum(hard * (1.0 - t))
    if mode == "focal":
        pt = np.exp(-bce)
        loss = np.mean((1.0 - pt) ** gamma * bce)
        return np.array([loss, inter, union, tp, fn, tn, fp])
    if mode == "bce_no_dice":
        return np.array([0.2 * np.mean(bce)] + [np.nan] * 6)
    if mode == "dice":
        return np.array([dice, inter, union, tp, fn, tn, fp])
    return np.array([0.1 * dice + 1.9 * np.mean(bce), inter, union, tp, fn, tn, fp])


if __name__ == "__main__":
    key = jax.random.PRNGKey(0)
    kx, kt, ks, kx2, kt2, ks2 = jax.random.split(key, 6)

    B, C, D, H, W = 2, 1, 8, 16, 16
    predict = jax.random.normal(kx, (B, C, D, H, W), dtype=jnp.float32)            # logits
    target = (jax.random.uniform(kt, (B, C, D, H, W)) > 0.5).astype(jnp.float32)   # 0/1

    # Dense-label modes, checked against the float64 reference.
    for mode in ("dice+bce", "dice", "focal", "bce_no_dice"):
        out = jax.block_until_ready(BinaryMetrics(mode)(predict, target))
        ref = _reference_metrics(predict, target, mode)
        if mode == "bce_no_dice":
            np.testing.assert_allclose(np.asarray(out[0]), ref[0],
                                       rtol=2e-4, atol=1e-4)
        else:
            np.testing.assert_allclose(np.asarray(jnp.stack(out)), ref,
                                       rtol=2e-4, atol=1e-3)

    # Sparse-label path (0 unlabeled, 1 fg, 2 bg) with a narrow int8 target stream.
    target_sparse = jax.random.randint(ks, (B, C, D, H, W), 0, 3).astype(jnp.int8)
    out_sp = jax.block_until_ready(
        BinaryMetrics("dice")(predict, target_sparse, sparse_label=True))
    ref_sp = _reference_metrics(predict, target_sparse, "dice", sparse=True)
    np.testing.assert_allclose(np.asarray(jnp.stack(out_sp)), ref_sp,
                               rtol=2e-4, atol=1e-3)

    out_sf = jax.block_until_ready(
        BinaryMetrics("focal")(predict, target_sparse, sparse_label=True))
    ref_sf = _reference_metrics(predict, target_sparse, "focal", sparse=True)
    np.testing.assert_allclose(np.asarray(jnp.stack(out_sf)), ref_sf,
                               rtol=2e-4, atol=1e-3)

    # Non-128-aligned size to exercise the sentinel-padding tail path.
    shape2 = (3, 1, 5, 7, 11)   # 1155 elements, not a multiple of 128
    predict2 = jax.random.normal(kx2, shape2, dtype=jnp.float32)
    target2 = (jax.random.uniform(kt2, shape2) > 0.5).astype(jnp.float32)
    out2 = jax.block_until_ready(BinaryMetrics("dice+bce")(predict2, target2))
    ref2 = _reference_metrics(predict2, target2, "dice+bce")
    np.testing.assert_allclose(np.asarray(jnp.stack(out2)), ref2,
                               rtol=2e-4, atol=1e-3)

    target2s = jax.random.randint(ks2, shape2, 0, 3).astype(jnp.int8)
    out2s = jax.block_until_ready(
        BinaryMetrics("dice")(predict2, target2s, sparse_label=True))
    ref2s = _reference_metrics(predict2, target2s, "dice", sparse=True)
    np.testing.assert_allclose(np.asarray(jnp.stack(out2s)), ref2s,
                               rtol=2e-4, atol=1e-3)

    print("KERNEL_OK")
</pallas_src>

<mosaic_0001>
module attributes {stable_mosaic.version = 11 : i64} {
  func.func @_metrics_kernel(%arg0: i32, %arg1: i32, %arg2: memref<32x128xf32, #tpu.memory_space<vmem>>, %arg3: memref<32x128xf32, #tpu.memory_space<vmem>>, %arg4: memref<8x128xf32, #tpu.memory_space<vmem>>) attributes {dimension_semantics = [#tpu.dimension_semantics<parallel>, #tpu.dimension_semantics<arbitrary>], iteration_bounds = array<i64: 1, 1>, scalar_prefetch = 0 : i64, scratch_operands = 0 : i64, tpu.core_type = #tpu.core_type<tc>, window_params = [{transform_indices = @transform_0, window_bounds = array<i64: 32, 128>}, {transform_indices = @transform_1, window_bounds = array<i64: 32, 128>}, {transform_indices = @transform_2, window_bounds = array<i64: 8, 128>}]} {
    %c0_i32 = arith.constant 0 : i32
    %0 = arith.cmpi eq, %arg1, %c0_i32 : i32
    %1 = arith.extui %0 : i1 to i32
    %c0_i32_0 = arith.constant 0 : i32
    %2 = arith.cmpi ne, %1, %c0_i32_0 : i32
    scf.if %2 {
      %cst_21 = arith.constant 0.000000e+00 : f32
      %48 = vector.broadcast %cst_21 : f32 to vector<8x128xf32>
      %c0_22 = arith.constant 0 : index
      %c0_23 = arith.constant 0 : index
      %49 = vector.load %arg4[%c0_22, %c0_23] : memref<8x128xf32, #tpu.memory_space<vmem>>, vector<8x128xf32>
      tpu.vector_store %arg4[%c0_22, %c0_23], %48 {strides = array<i32>} : memref<8x128xf32, #tpu.memory_space<vmem>>, vector<8x128xf32>,
    } else {
    }
    %c0 = arith.constant 0 : index
    %c0_1 = arith.constant 0 : index
    %3 = vector.load %arg2[%c0, %c0_1] : memref<32x128xf32, #tpu.memory_space<vmem>>, vector<32x128xf32>
    %c0_2 = arith.constant 0 : index
    %c0_3 = arith.constant 0 : index
    %4 = vector.load %arg3[%c0_2, %c0_3] : memref<32x128xf32, #tpu.memory_space<vmem>>, vector<32x128xf32>
    %cst = arith.constant 0.000000e+00 : f32
    %5 = vector.broadcast %cst : f32 to vector<1x128xf32>
    %6 = math.absf %3 : vector<32x128xf32>
    %cst_4 = arith.constant 0.000000e+00 : f32
    %7 = vector.broadcast %cst_4 : f32 to vector<32x128xf32>
    %8 = arith.subf %7, %6 : vector<32x128xf32>
    %9 = math.exp %8 : vector<32x128xf32>
    %cst_5 = arith.constant 0.000000e+00 : f32
    %10 = vector.broadcast %cst_5 : f32 to vector<32x128xf32>
    %11 = arith.maximumf %3, %10 : vector<32x128xf32>
    %12 = arith.mulf %3, %4 : vector<32x128xf32>
    %13 = arith.subf %11, %12 : vector<32x128xf32>
    %cst_6 = arith.constant 1.000000e+00 : f32
    %14 = vector.broadcast %cst_6 : f32 to vector<32x128xf32>
    %15 = arith.addf %14, %9 : vector<32x128xf32>
    %16 = math.log %15 : vector<32x128xf32>
    %17 = arith.addf %13, %16 : vector<32x128xf32>
    %cst_7 = arith.constant dense<0.000000e+00> : vector<128xf32>
    %18 = vector.multi_reduction <add>, %17, %cst_7 [0] : vector<32x128xf32> to vector<128xf32>
    %19 = vector.shape_cast %18 : vector<128xf32> to vector<1x128xf32>
    %cst_8 = arith.constant 1.000000e+00 : f32
    %20 = vector.broadcast %cst_8 : f32 to vector<32x128xf32>
    %21 = arith.addf %20, %9 : vector<32x128xf32>
    %cst_9 = arith.constant 1.000000e+00 : f32
    %22 = vector.broadcast %cst_9 : f32 to vector<32x128xf32>
    %23 = arith.divf %22, %21 : vector<32x128xf32>
    %cst_10 = arith.constant 0.000000e+00 : f32
    %24 = vector.broadcast %cst_10 : f32 to vector<32x128xf32>
    %25 = arith.cmpf oge, %3, %24 : vector<32x128xf32>
    %26 = arith.mulf %9, %23 : vector<32x128xf32>
    %27 = arith.select %25, %23, %26 : vector<32x128xi1>, vector<32x128xf32>
    %cst_11 = arith.constant dense<0.000000e+00> : vector<128xf32>
    %28 = vector.multi_reduction <add>, %27, %cst_11 [0] : vector<32x128xf32> to vector<128xf32>
    %29 = vector.shape_cast %28 : vector<128xf32> to vector<1x128xf32>
    %30 = arith.mulf %27, %4 : vector<32x128xf32>
    %cst_12 = arith.constant dense<0.000000e+00> : vector<128xf32>
    %31 = vector.multi_reduction <add>, %30, %cst_12 [0] : vector<32x128xf32> to vector<128xf32>
    %32 = vector.shape_cast %31 : vector<128xf32> to vector<1x128xf32>
    %cst_13 = arith.constant 0.000000e+00 : f32
    %33 = vector.broadcast %cst_13 : f32 to vector<32x128xf32>
    %34 = arith.cmpf oge, %3, %33 : vector<32x128xf32>
    %35 = arith.extui %34 : vector<32x128xi1> to vector<32x128xi32>
    %36 = arith.sitofp %35 : vector<32x128xi32> to vector<32x128xf32>
    %cst_14 = arith.constant dense<0.000000e+00> : vector<128xf32>
    %37 = vector.multi_reduction <add>, %36, %cst_14 [0] : vector<32x128xf32> to vector<128xf32>
    %38 = vector.shape_cast %37 : vector<128xf32> to vector<1x128xf32>
    %39 = arith.mulf %36, %4 : vector<32x128xf32>
    %cst_15 = arith.constant dense<0.000000e+00> : vector<128xf32>
    %40 = vector.multi_reduction <add>, %39, %cst_15 [0] : vector<32x128xf32> to vector<128xf32>
    %41 = vector.shape_cast %40 : vector<128xf32> to vector<1x128xf32>
    %cst_16 = arith.constant dense<0.000000e+00> : vector<128xf32>
    %42 = vector.multi_reduction <add>, %4, %cst_16 [0] : vector<32x128xf32> to vector<128xf32>
    %43 = vector.shape_cast %42 : vector<128xf32> to vector<1x128xf32>
    %c0_17 = arith.constant 0 : index
    %c0_18 = arith.constant 0 : index
    %44 = vector.load %arg4[%c0_17, %c0_18] : memref<8x128xf32, #tpu.memory_space<vmem>>, vector<8x128xf32>
    %45 = tpu.concatenate %19, %5, %29, %43, %32, %38, %41, %5 in 0 : vector<1x128xf32>, vector<1x128xf32>, vector<1x128xf32>, vector<1x128xf32>, vector<1x128xf32>, vector<1x128xf32>, vector<1x128xf32>, vector<1x128xf32> -> vector<8x128xf32>
    %46 = arith.addf %44, %45 : vector<8x128xf32>
    %c0_19 = arith.constant 0 : index
    %c0_20 = arith.constant 0 : index
    %47 = vector.load %arg4[%c0_19, %c0_20] : memref<8x128xf32, #tpu.memory_space<vmem>>, vector<8x128xf32>
    tpu.vector_store %arg4[%c0_19, %c0_20], %46 {strides = array<i32>} : memref<8x128xf32, #tpu.memory_space<vmem>>, vector<8x128xf32>,
    return
  }
  func.func @transform_0(%arg0: i32, %arg1: i32) -> (i32, i32) {
    %c1_i32 = arith.constant 1 : i32
    %0 = arith.muli %arg0, %c1_i32 : i32
    %1 = arith.addi %0, %arg1 : i32
    %c0_i32 = arith.constant 0 : i32
    %c0_i32_0 = arith.constant 0 : i32
    return %1, %c0_i32 : i32, i32
  }
  func.func @transform_1(%arg0: i32, %arg1: i32) -> (i32, i32) {
    %c1_i32 = arith.constant 1 : i32
    %0 = arith.muli %arg0, %c1_i32 : i32
    %1 = arith.addi %0, %arg1 : i32
    %c0_i32 = arith.constant 0 : i32
    %c0_i32_0 = arith.constant 0 : i32
    return %1, %c0_i32 : i32, i32
  }
  func.func @transform_2(%arg0: i32, %arg1: i32) -> (i32, i32) {
    %c0_i32 = arith.constant 0 : i32
    %c0_i32_0 = arith.constant 0 : i32
    return %arg0, %c0_i32 : i32, i32
  }
}

</mosaic_0001>

<bundles_post_ra>
// kernel: tpu_custom_call.1
= control target key start
LH: loop header
LB: loop body
LE: loop exit
PB: predicated region body
PF: predicated region fallthrough
CT: control target
= control target key end

     0   :  { %7 = vsyncpa [#allocation3], 0  ;;  %s608_s0 = inlined_call_operand.hbm [shape: f32[32,128], index: 0, kind: input, shape index: {}]   ;;  %s609_s1 = inlined_call_operand.hbm [shape: f32[32,128], index: 1, kind: input, shape index: {}]   ;;  %s610_s2 = inlined_call_operand.hbm [shape: f32[8,128], index: 2, kind: output, shape index: {}]  }
   0x1   :  { %8 = vsyncpa [#allocation6], 0 }
   0x2   :  { %9 = vsyncpa [#allocation4], 0  ;;  %s18_s11 = sshll.u32 %s608_s0, 4  ;;  %s402_s12 = smov [#allocation2]   ;;  %s19_s11 = int_to_ptr.hbm [resolvable:$true] %s18_s11 }
   0x3   :  { %s20_s13 = sshll.u32 %s402_s12, 4  ;;  %s35_s16 = sshll.u32 %s609_s1, 4  ;;  %s21_s13 = int_to_ptr.vmem [resolvable:$true] %s20_s13  ;;  %s36_s16 = int_to_ptr.hbm [resolvable:$true] %s35_s16 }
   0x4   :  { %s403_s17 = smov 128   ;;  %s404_s18 = smov 8  }
   0x5   :  { %26 = dma.hbm_to_vmem [thread:$0]  %s19_s11, 512, %s21_s13, [#allocation3], %s403_s17, %s403_s17, %s404_s18  }
   0x6   :  { %s405_s19 = smov [#allocation5]  }
   0x7   :  { %s37_s20 = sshll.u32 %s405_s19, 4  ;;  %s38_s20 = int_to_ptr.vmem [resolvable:$true] %s37_s20 }
   0x8   :  { %43 = dma.hbm_to_vmem [thread:$0]  %s36_s16, 512, %s38_s20, [#allocation6], %s403_s17, %s403_s17, %s404_s18  }
   0x9   :  { %396 = dma.done.wait [#allocation3], 512  }
   0xa   :  { %397 = vsyncadd [#allocation3], 4294966784 }
   0xb   :  { %398 = dma.done.wait [#allocation6], 512  }
   0xc   :  { %399 = vsyncadd [#allocation6], 4294966784  ;;  %v429_v0 = vld [vmem:[#allocation2] sm:$0xff]  ;;  %v431_v1 = vld [vmem:[#allocation2 + $0x8] sm:$0xff]  ;;  %v406_v20 = vmov 0.0   ;;  %s407_s0 = smov [#allocation7]  }
   0xd   :  { %v433_v2 = vld [vmem:[#allocation2 + $0x10] sm:$0xff]  ;;  %v435_v3 = vld [vmem:[#allocation2 + $0x18] sm:$0xff]  ;;  %v69_v4 = vand.u32 2147483647, %v429_v0  ;;  %v70_v5 = vand.u32 2147483647, %v431_v1 }
   0xe   :  { %v71_v6 = vand.u32 2147483647, %v433_v2  ;;  %v72_v7 = vand.u32 2147483647, %v435_v3  ;;  %v441_v16 = vld [vmem:[#allocation5] sm:$0xff]  ;;  %v443_v17 = vld [vmem:[#allocation5 + $0x8] sm:$0xff] }
   0xf   :  { %v73_v8 = vsub.f32 0.0, %v69_v4  ;;  %v74_v9 = vsub.f32 0.0, %v70_v5  ;;  %v445_v18 = vld [vmem:[#allocation5 + $0x10] sm:$0xff]  ;;  %vm182_vm0 = vcmp.ge.f32.partialorder %v429_v0, 0.0  ;;  %vm183_vm1 = vcmp.ge.f32.partialorder %v431_v1, 0.0  ;;  %v456_v24 = vld [vmem:[#allocation5 + $0x18] sm:$0xff] }
  0x10   :  { %v75_v10 = vsub.f32 0.0, %v71_v6  ;;  %v76_v11 = vsub.f32 0.0, %v72_v7  ;;  %v85_v19 = vmax.f32 %v429_v0, 0.0  ;;  %v290_v21 = vsel %vm182_vm0, 1.0, %v406_v20  ;;  %s277_s1 = sshll.u32 %s407_s0, 4  ;;  %s279_s23 = sshll.u32 %s610_s2, 4  ;;  %s278_s1 = int_to_ptr.vmem [resolvable:$true] %s277_s1  ;;  %s280_s23 = int_to_ptr.hbm [resolvable:$true] %s279_s23 }
  0x11   :  { %v77_v12 = vmul.f32 1.442695, %v73_v8  ;;  %v79_v13 = vmul.f32 1.442695, %v74_v9  ;;  %v291_v22 = vsel %vm183_vm1, 1.0, %v406_v20  ;;  %v86_v25 = vmax.f32 %v431_v1, 0.0 }
  0x12   :  { %v81_v14 = vmul.f32 1.442695, %v75_v10  ;;  %v83_v15 = vmul.f32 1.442695, %v76_v11  ;;  %v89_v26 = vmul.f32 %v441_v16, %v429_v0  ;;  %v90_v27 = vmul.f32 %v443_v17, %v431_v1 }
  0x13   :  { %300 = vpow2.f32 %v77_v12  ;;  %v246_v28 = vadd.f32 %v443_v17, %v441_v16  ;;  %v87_v30 = vmax.f32 %v433_v2, 0.0  ;;  %v88_v31 = vmax.f32 %v435_v3, 0.0 }
  0x14   :  { %302 = vpow2.f32 %v79_v13  ;;  %v91_v32 = vmul.f32 %v445_v18, %v433_v2  ;;  %vm612_vm2 = vcmp.ge.f32.partialorder %v433_v2, 0.0  ;;  %v233_v36 = vmul.f32 %v290_v21, %v441_v16 }
  0x15   :  { %304 = vpow2.f32 %v81_v14  ;;  %v234_v37 = vmul.f32 %v291_v22, %v443_v17  ;;  %v92_v39 = vmul.f32 %v456_v24, %v435_v3  ;;  %v292_v41 = vsel %vm612_vm2, 1.0, %v406_v20 }
  0x16   :  { %306 = vpow2.f32 %v83_v15  ;;  %v224_v43 = vadd.f32 %v291_v22, %v290_v21  ;;  %v247_v44 = vadd.f32 %v246_v28, %v445_v18  ;;  %v93_v45 = vsub.f32 %v85_v19, %v89_v26 }
  0x17   :  { %v94_v46 = vsub.f32 %v86_v25, %v90_v27  ;;  %vm611_vm3 = vcmp.ge.f32.partialorder %v435_v3, 0.0  ;;  %v235_v48 = vmul.f32 %v292_v41, %v445_v18  ;;  %v237_v49 = vadd.f32 %v234_v37, %v233_v36 }
  0x18   :  { %v502_v47 = vsel %vm611_vm3, 1.0, %v406_v20  ;;  %v95_v50 = vsub.f32 %v87_v30, %v91_v32  ;;  %v96_v51 = vsub.f32 %v88_v31, %v92_v39  ;;  %v225_v54 = vadd.f32 %v292_v41, %v224_v43 }
  0x19   :  { %v454_v23 = vpop.eup %300  ;;  %v510_v55 = vadd.f32 %v247_v44, %v456_v24  ;;  %v236_v59 = vmul.f32 %v502_v47, %v456_v24  ;;  %v238_v63 = vadd.f32 %v237_v49, %v235_v48 }
  0x1a   :  { %v465_v29 = vpop.eup %302  ;;  %v472_v33 = vadd.f32 1.0, %v454_v23 }
  0x1b   :  { %v474_v34 = vpop.eup %304  ;;  %v477_v35 = vadd.f32 1.0, %v465_v29 }
  0x1c   :  { %v482_v38 = vpop.eup %306  ;;  %v487_v40 = vadd.f32 1.0, %v474_v34  ;;  %308 = vlog2.f32 %v472_v33  ;;  %v133_v52 = vand.u32 2147483648, %v472_v33  ;;  %v131_v53 = vand.u32 2147483647, %v472_v33 }
  0x1d   :  { %v493_v42 = vadd.f32 1.0, %v482_v38  ;;  %310 = vlog2.f32 %v477_v35  ;;  %v146_v57 = vand.u32 2147483647, %v477_v35  ;;  %v148_v58 = vand.u32 2147483648, %v477_v35 }
  0x1e   :  { %312 = vlog2.f32 %v487_v40  ;;  %v161_v62 = vand.u32 2147483647, %v487_v40  ;;  %vm127_vm4 = vweird.f32 %v472_v33  ;;  %v134_v6 = vor.u32 1.1754944e-38, %v133_v52 }
  0x1f   :  { %314 = vlog2.f32 %v493_v42  ;;  %vm142_vm5 = vweird.f32 %v477_v35  ;;  %vm521_vm6 = vcmp.eq.f32.partialorder %v131_v53, 8.507059e+37  ;;  %vm157_vm7 = vweird.f32 %v487_v40 }
  0x20   :  { %316 = vrcp.f32 %v472_v33  ;;  %v163_v11 = vand.u32 2147483648, %v487_v40  ;;  %vm527_vm8 = vcmp.eq.f32.partialorder %v146_v57, 8.507059e+37  ;;  %v149_v19 = vor.u32 1.1754944e-38, %v148_v58 }
  0x21   :  { %318 = vrcp.f32 %v477_v35  ;;  %vm532_vm9 = vcmp.eq.f32.partialorder %v161_v62, 8.507059e+37  ;;  %vm172_vm10 = vweird.f32 %v493_v42  ;;  %v176_v31 = vand.u32 2147483647, %v493_v42 }
  0x22   :  { %v309_v56 = vpop.eup %308  ;;  %320 = vrcp.f32 %v487_v40  ;;  %v164_v39 = vor.u32 1.1754944e-38, %v163_v11  ;;  %v178_v48 = vand.u32 2147483648, %v493_v42 }
  0x23   :  { %v311_v60 = vpop.eup %310  ;;  %v102_v61 = vmul.f32 0.6931472, %v309_v56  ;;  %322 = vrcp.f32 %v493_v42  ;;  %vm554_vm2 = vcmp.eq.f32.partialorder %v176_v31, 8.507059e+37 }
  0x24   :  { %v313_v4 = vpop.eup %312  ;;  %v104_v5 = vmul.f32 0.6931472, %v311_v60 }
  0x25   :  { %v315_v7 = vpop.eup %314  ;;  %v106_v8 = vmul.f32 0.6931472, %v313_v4  ;;  %v109_v9 = vadd.f32 %v102_v61, %v93_v45 }
  0x26   :  { %v317_v12 = vpop.eup %316  ;;  %v108_v13 = vmul.f32 0.6931472, %v315_v7  ;;  %v110_v14 = vadd.f32 %v104_v5, %v94_v46 }
  0x27   :  { %v319_v20 = vpop.eup %318  ;;  %v111_v21 = vadd.f32 %v106_v8, %v95_v50  ;;  %v123_v22 = vmul.f32 %v317_v12, %v472_v33  ;;  %vm128_vm11 = vweird.f32 %v317_v12  ;;  %v226_v33 = vadd.f32 %v502_v47, %v225_v54 }
  0x28   :  { %v321_v26 = vpop.eup %320  ;;  %v112_v27 = vadd.f32 %v108_v13, %v96_v51  ;;  %v113_v28 = vadd.f32 %v110_v14, %v109_v9  ;;  %v138_v30 = vmul.f32 %v319_v20, %v477_v35  ;;  %vm143_vm12 = vweird.f32 %v319_v20  ;;  %vm544_vm14 = vmor %vm127_vm4, %vm128_vm11 }
  0x29   :  { %v323_v32 = vpop.eup %322  ;;  %v124_v36 = vsub.f32 1.0, %v123_v22  ;;  %v153_v37 = vmul.f32 %v321_v26, %v487_v40  ;;  %vm158_vm13 = vweird.f32 %v321_v26  ;;  %vm550_vm3 = vmor %vm142_vm5, %vm143_vm12  ;;  %v239_v35 = vadd.f32 %v238_v63, %v236_v59 }
  0x2a   :  { %v114_v41 = vadd.f32 %v113_v28, %v111_v21  ;;  %v139_v43 = vsub.f32 1.0, %v138_v30  ;;  %v168_v44 = vmul.f32 %v323_v32, %v493_v42  ;;  %vm173_vm15 = vweird.f32 %v323_v32  ;;  %vm561_vm4 = vmor %vm157_vm7, %vm158_vm13 }
  0x2b   :  { %v125_v45 = vmul.f32 %v317_v12, %v124_v36  ;;  %v154_v46 = vsub.f32 1.0, %v153_v37  ;;  %vm569_vm5 = vmor %vm172_vm10, %vm173_vm15  ;;  %v179_v47 = vor.u32 1.1754944e-38, %v178_v48  ;;  %v249_v40 = vrot.slane %v510_v55, 4 }
  0x2c   :  { %v140_v50 = vmul.f32 %v319_v20, %v139_v43  ;;  %v169_v51 = vsub.f32 1.0, %v168_v44  ;;  %v115_v52 = vadd.f32 %v114_v41, %v112_v27  ;;  %v227_v13 = vrot.slane %v226_v33, 4 }
  0x2d   :  { %v126_v53 = vadd.f32 %v317_v12, %v125_v45  ;;  %v155_v57 = vmul.f32 %v321_v26, %v154_v46  ;;  %vm262_vm7 = vcmask 1043456   ;;  %vm268_vm10 = vcmask 1046528  }
  0x2e   :  { %v141_v60 = vadd.f32 %v319_v20, %v140_v50  ;;  %v170_v62 = vmul.f32 %v323_v32, %v169_v51  ;;  %v116_v4 = vrot.slane %v115_v52, 4 }
  0x2f   :  { %v130_v5 = vsel %vm544_vm14, %v317_v12, %v126_v53  ;;  %v156_v7 = vadd.f32 %v321_v26, %v155_v57 }
  0x30   :  { %v135_v54 = vsel %vm521_vm6, %v134_v6, %v130_v5  ;;  %v145_v59 = vsel %vm550_vm3, %v319_v20, %v141_v60  ;;  %v171_v63 = vadd.f32 %v323_v32, %v170_v62  ;;  %v117_v9 = vadd.f32 %v116_v4, %v115_v52 }
  0x31   :  { %v150_v11 = vsel %vm527_vm8, %v149_v19, %v145_v59  ;;  %v160_v42 = vsel %vm561_vm4, %v321_v26, %v156_v7  ;;  %v186_v12 = vmul.f32 %v454_v23, %v135_v54  ;;  %v240_v20 = vrot.slane %v239_v35, 4 }
  0x32   :  { %v165_v14 = vsel %vm532_vm9, %v164_v39, %v160_v42  ;;  %v175_v6 = vsel %vm569_vm5, %v323_v32, %v171_v63  ;;  %v187_v10 = vmul.f32 %v465_v29, %v150_v11  ;;  %v250_v23 = vadd.f32 %v249_v40, %v510_v55 }
  0x33   :  { %v180_v21 = vsel %vm554_vm2, %v179_v47, %v175_v6  ;;  %v188_v15 = vmul.f32 %v474_v34, %v165_v14  ;;  %v190_v19 = vsel %vm182_vm0, %v135_v54, %v186_v12  ;;  %v118_v27 = vrot.slane %v117_v9, 2 }
  0x34   :  { %v189_v22 = vmul.f32 %v482_v38, %v180_v21  ;;  %v191_v25 = vsel %vm183_vm1, %v150_v11, %v187_v10  ;;  %v203_v26 = vmul.f32 %v190_v19, %v441_v16  ;;  %vm629_vm3 = vcmp.ge.f32.partialorder %v433_v2, 0.0 }
  0x35   :  { %v192_v29 = vsel %vm629_vm3, %v165_v14, %v188_v15  ;;  %v194_v28 = vadd.f32 %v191_v25, %v190_v19  ;;  %v204_v30 = vmul.f32 %v191_v25, %v443_v17  ;;  %vm630_vm2 = vcmp.ge.f32.partialorder %v435_v3, 0.0 }
  0x36   :  { %v193_v0 = vsel %vm630_vm2, %v180_v21, %v189_v22  ;;  %v205_v34 = vmul.f32 %v192_v29, %v445_v18  ;;  %v228_v55 = vadd.f32 %v227_v13, %v226_v33  ;;  %v241_v32 = vadd.f32 %v240_v20, %v239_v35 }
  0x37   :  { %v195_v31 = vadd.f32 %v194_v28, %v192_v29  ;;  %v206_v38 = vmul.f32 %v193_v0, %v456_v24  ;;  %v207_v1 = vadd.f32 %v204_v30, %v203_v26  ;;  %v119_v36 = vadd.f32 %v118_v27, %v117_v9 }
  0x38   :  { %v251_v16 = vrot.slane %v250_v23, 2  ;;  %v229_v2 = vrot.slane %v228_v55, 2  ;;  %v242_v44 = vrot.slane %v241_v32, 2  ;;  %vm256_vm0 = vcmask 1040384  }
  0x39   :  { %v196_v37 = vadd.f32 %v195_v31, %v193_v0  ;;  %v208_v39 = vadd.f32 %v207_v1, %v205_v34  ;;  %v120_v17 = vrot.slane %v119_v36, 1  ;;  %vm258_vm1 = vcmask 1041408  }
  0x3a   :  { %v252_v45 = vadd.f32 %v251_v16, %v250_v23  ;;  %v230_v48 = vadd.f32 %v229_v2, %v228_v55  ;;  %v243_v50 = vadd.f32 %v242_v44, %v241_v32  ;;  %vm260_vm6 = vcmask 1042432  }
  0x3b   :  { %v197_v41 = vrot.slane %v196_v37, 4  ;;  %v209_v43 = vadd.f32 %v208_v39, %v206_v38  ;;  %v121_v51 = vadd.f32 %v120_v17, %v119_v36  ;;  %vm264_vm8 = vcmask 1044480  }
  0x3c   :  { %v253_v24 = vrot.slane %v252_v45, 1  ;;  %v231_v56 = vrot.slane %v230_v48, 1  ;;  %v244_v33 = vrot.slane %v243_v50, 1  ;;  %vm266_vm9 = vcmask 1045504  }
  0x3d   :  { %v198_v3 = vadd.f32 %v197_v41, %v196_v37  ;;  %v210_v46 = vrot.slane %v209_v43, 4  ;;  %v257_v61 = vsel %vm256_vm0, %v121_v51, 0.0 }
  0x3e   :  { %v254_v60 = vadd.f32 %v253_v24, %v252_v45  ;;  %v232_v4 = vadd.f32 %v231_v56, %v230_v48  ;;  %v245_v7 = vadd.f32 %v244_v33, %v243_v50 }
  0x3f   :  { %v199_v18 = vrot.slane %v198_v3, 2  ;;  %v211_v49 = vadd.f32 %v210_v46, %v209_v43 }
  0x41   :  { %v200_v52 = vadd.f32 %v199_v18, %v198_v3  ;;  %v212_v53 = vrot.slane %v211_v49, 2 }
  0x43   :  { %v201_v57 = vrot.slane %v200_v52, 1  ;;  %v213_v58 = vadd.f32 %v212_v53, %v211_v49 }
  0x45   :  { %v202_v62 = vadd.f32 %v201_v57, %v200_v52  ;;  %v214_v35 = vrot.slane %v213_v58, 1 }
  0x47   :  { %v215_v5 = vadd.f32 %v214_v35, %v213_v58  ;;  %v259_v8 = vsel %vm258_vm1, %v257_v61, %v202_v62 }
  0x48   :  { %v261_v47 = vsel %vm260_vm6, %v259_v8, %v254_v60 }
  0x49   :  { %v263_v40 = vsel %vm262_vm7, %v261_v47, %v215_v5 }
  0x4a   :  { %v265_v54 = vsel %vm264_vm8, %v263_v40, %v232_v4 }
  0x4b   :  { %v267_v59 = vsel %vm266_vm9, %v265_v54, %v245_v7 }
  0x4c   :  { %v269_v63 = vsel %vm268_vm10, %v267_v59, 0.0 }
  0x4d   :  { %271 = vst [vmem:[#allocation7] sm:$0xff] %v269_v63 }
  0x4e   :  { %282 = dma.vmem_to_hbm [thread:$0]  %s278_s1, 128, %s280_s23, [#allocation4]  }
  0x4f   :  { %400 = dma.done.wait [#allocation4], 128  }
  0x50   :  { %401 = vsyncadd [#allocation4], 4294967168 }
  0x51   :  { %287 = vsyncpa [#allocation3], 1 }
  0x52   :  { %288 = vsyncpa [#allocation6], 1 }
  0x53   :  { %289 = vsyncpa [#allocation4], 1 }

</bundles_post_ra>
